<compile_context>
chip_gen: v7x
topology: tpu7x:2x2x1
jax: 0.10.0
libtpu: 0.0.40
codegen_flags: <defaults>
</compile_context>

<pallas_src>
import jax
import jax.numpy as jnp
from jax.experimental import pallas as pl
from jax.experimental.pallas import tpu as pltpu


def _make_mlp_kernel(num_layers):
    """Fused kernel for `num_layers` Linear layers (ReLU between all but last).

    Operates on a (C, tile_l) activation block; each layer does W @ h + b with
    f32 accumulation.  Bias-add and ReLU stay in f32 even if inputs are bf16.
    """

    def kernel(x_ref, *refs):
        # refs = (w0, b0, w1, b1, ..., w_{L-1}, b_{L-1}, o_ref)
        o_ref = refs[-1]
        wb = refs[:-1]
        h = x_ref[...]                                    # (C_in, tile_l)
        for l in range(num_layers):                       # static unroll (few layers)
            w = wb[2 * l][...]                            # (out_l, in_l)
            b = wb[2 * l + 1][...]                        # (out_l, 1), f32
            acc = jnp.dot(w, h.astype(w.dtype),
                          preferred_element_type=jnp.float32)
            acc = acc + b                                 # lane-broadcast bias
            if l < num_layers - 1:
                acc = jnp.maximum(acc, 0.0)               # ReLU on hidden layers
            h = acc                                       # f32 carried forward
        o_ref[...] = h.astype(o_ref.dtype)

    return kernel


def _pick_tile_l(L, cap=4096):
    """Largest multiple of 128 that divides L (capped); full L if not 128-aligned."""
    if L % 128 != 0:
        return L  # block == full array dim is legal (small / ragged case)
    best = 128
    t = 256
    while t <= min(L, cap):
        if L % t == 0:
            best = t
        t += 128
    return best


def mlp_forward(x, weights, biases, *, tile_l=None, compute_dtype=None):
    """x: (B, C, L).  weights[l]: (out_l, in_l) (PyTorch layout).  biases[l]: (out_l,).

    Returns (B, out_last, L), matching PyTorch MLP.forward.
    compute_dtype=jnp.bfloat16 halves HBM traffic on v6e/v7x (mem-bound kernel);
    accumulation, bias-add and ReLU remain f32 either way.
    """
    B, C, L = x.shape
    num_layers = len(weights)
    assert num_layers >= 1
    assert weights[0].shape[1] == C, "first layer in_features must match C"

    if compute_dtype is not None:
        x = x.astype(compute_dtype)
        weights = [w.astype(compute_dtype) for w in weights]
    out_dim = weights[-1].shape[0]
    out_dtype = x.dtype

    if tile_l is None:
        tile_l = _pick_tile_l(L)
    assert L % tile_l == 0 and (tile_l % 128 == 0 or tile_l == L), \
        "tile_l must divide L and be a multiple of 128 (or equal L)"

    grid = (B, L // tile_l)
    kernel = _make_mlp_kernel(num_layers)

    # Activation block: leading batch dim squeezed; lane dim = tile_l (dense).
    in_specs = [pl.BlockSpec((None, C, tile_l), lambda b, j: (b, 0, j))]
    args = [x]
    # Weights/biases are grid-invariant and tiny (< ~20 KB total here); the
    # default double-buffering costs negligible VMEM.
    for w, bias in zip(weights, biases):
        fout, fin = w.shape
        in_specs.append(pl.BlockSpec((fout, fin), lambda b, j: (0, 0)))
        in_specs.append(pl.BlockSpec((fout, 1), lambda b, j: (0, 0)))
        args.append(w)
        args.append(bias.astype(jnp.float32).reshape(fout, 1))

    # Advisory cost estimate for XLA's scheduler.
    flops = 2 * B * L * sum(int(w.shape[0]) * int(w.shape[1]) for w in weights)
    bytes_accessed = int(
        x.size * x.dtype.itemsize
        + sum(w.size * w.dtype.itemsize for w in weights)
        + sum(b.size * 4 for b in biases)
        + B * out_dim * L * jnp.dtype(out_dtype).itemsize
    )
    cost = pl.CostEstimate(flops=flops, transcendentals=0,
                           bytes_accessed=bytes_accessed)

    out = pl.pallas_call(
        kernel,
        out_shape=jax.ShapeDtypeStruct((B, out_dim, L), out_dtype),
        grid_spec=pltpu.PrefetchScalarGridSpec(
            num_scalar_prefetch=0,
            grid=grid,
            in_specs=in_specs,
            out_specs=pl.BlockSpec((None, out_dim, tile_l),
                                   lambda b, j: (b, 0, j)),
        ),
        compiler_params=pltpu.CompilerParams(
            dimension_semantics=("parallel", "parallel"),
            # Above v5e's 16 MiB scoped default, within v7x's 64 MiB physical.
            vmem_limit_bytes=32 * 1024 * 1024,
        ),
        cost_estimate=cost,
    )(*args)

    return out  # already (B, out_dim, L): no wrapper transposes needed


def init_mlp_params(key, input_size, hidden_sizes, output_size):
    """Deterministic synthetic params; weight[l] has PyTorch shape (out_l, in_l)."""
    sizes = [input_size] + list(hidden_sizes) + [output_size]
    weights, biases = [], []
    for l in range(len(sizes) - 1):
        key, kw, kb = jax.random.split(key, 3)
        fan_in, fan_out = sizes[l], sizes[l + 1]
        bound = 1.0 / (fan_in ** 0.5)  # same scale as torch.nn.Linear default init
        weights.append(jax.random.uniform(kw, (fan_out, fan_in), jnp.float32,
                                          -bound, bound))
        biases.append(jax.random.uniform(kb, (fan_out,), jnp.float32,
                                         -bound, bound))
    return weights, biases


def mlp_reference(x, weights, biases):
    """Pure-JAX reference matching the PyTorch forward (weights in (out, in))."""
    h = jnp.transpose(x, (0, 2, 1))  # (B, L, C)
    for l, (w, b) in enumerate(zip(weights, biases)):
        h = h @ w.T + b
        if l < len(weights) - 1:
            h = jnp.maximum(h, 0.0)
    return jnp.transpose(h, (0, 2, 1))  # (B, out, L)


if __name__ == "__main__":
    # Small shapes consistent with the module: x is (batch, input_size, seq_len).
    input_size = 4
    hidden_sizes = [32, 64]
    output_size = 8
    B, L = 2, 512  # L a multiple of 128 -> lane-dense tiling path exercised

    key = jax.random.PRNGKey(0)
    key, kx = jax.random.split(key)
    x = jax.random.normal(kx, (B, input_size, L), dtype=jnp.float32)

    weights, biases = init_mlp_params(key, input_size, hidden_sizes, output_size)

    fwd = jax.jit(mlp_forward)
    y = jax.block_until_ready(fwd(x, weights, biases))

    y_ref = mlp_reference(x, weights, biases)
    assert y.shape == (B, output_size, L), y.shape
    assert jnp.allclose(y, y_ref, atol=1e-5, rtol=1e-5), "mismatch vs reference"

    print("KERNEL_OK")
</pallas_src>

<mosaic_0001>
module attributes {stable_mosaic.version = 11 : i64} {
  func.func @kernel(%arg0: i32, %arg1: i32, %arg2: memref<1x4x512xf32, #tpu.memory_space<vmem>>, %arg3: memref<32x4xf32, #tpu.memory_space<vmem>>, %arg4: memref<32x1xf32, #tpu.memory_space<vmem>>, %arg5: memref<64x32xf32, #tpu.memory_space<vmem>>, %arg6: memref<64x1xf32, #tpu.memory_space<vmem>>, %arg7: memref<8x64xf32, #tpu.memory_space<vmem>>, %arg8: memref<8x1xf32, #tpu.memory_space<vmem>>, %arg9: memref<1x8x512xf32, #tpu.memory_space<vmem>>) attributes {dimension_semantics = [#tpu.dimension_semantics<parallel>, #tpu.dimension_semantics<parallel>], iteration_bounds = array<i64: 2, 1>, scalar_prefetch = 0 : i64, scratch_operands = 0 : i64, tpu.core_type = #tpu.core_type<tc>, window_params = [{transform_indices = @transform_0, window_bounds = array<i64: 1, 4, 512>}, {pipeline_mode = #tpu.pipeline_mode<synchronous>, transform_indices = @transform_1, window_bounds = array<i64: 32, 4>}, {pipeline_mode = #tpu.pipeline_mode<synchronous>, transform_indices = @transform_2, window_bounds = array<i64: 32, 1>}, {pipeline_mode = #tpu.pipeline_mode<synchronous>, transform_indices = @transform_3, window_bounds = array<i64: 64, 32>}, {pipeline_mode = #tpu.pipeline_mode<synchronous>, transform_indices = @transform_4, window_bounds = array<i64: 64, 1>}, {pipeline_mode = #tpu.pipeline_mode<synchronous>, transform_indices = @transform_5, window_bounds = array<i64: 8, 64>}, {pipeline_mode = #tpu.pipeline_mode<synchronous>, transform_indices = @transform_6, window_bounds = array<i64: 8, 1>}, {transform_indices = @transform_7, window_bounds = array<i64: 1, 8, 512>}]} {
    %c0 = arith.constant 0 : index
    %c0_0 = arith.constant 0 : index
    %c0_1 = arith.constant 0 : index
    %0 = vector.load %arg2[%c0, %c0_0, %c0_1] : memref<1x4x512xf32, #tpu.memory_space<vmem>>, vector<1x4x512xf32>
    %1 = vector.shape_cast %0 : vector<1x4x512xf32> to vector<4x512xf32>
    %c0_2 = arith.constant 0 : index
    %c0_3 = arith.constant 0 : index
    %2 = vector.load %arg3[%c0_2, %c0_3] : memref<32x4xf32, #tpu.memory_space<vmem>>, vector<32x4xf32>
    %c0_4 = arith.constant 0 : index
    %c0_5 = arith.constant 0 : index
    %3 = vector.load %arg4[%c0_4, %c0_5] : memref<32x1xf32, #tpu.memory_space<vmem>>, vector<32x1xf32>
    %cst = arith.constant dense<0.000000e+00> : vector<32x512xf32>
    %4 = tpu.matmul %2, %1, %cst {dimension_numbers = #tpu.dot_dimension_numbers<[1], [0], [0], [1], [0, 0, 1, 1], [], []>} : vector<32x4xf32>, vector<4x512xf32>, vector<32x512xf32> -> vector<32x512xf32>
    %5 = vector.broadcast %3 : vector<32x1xf32> to vector<32x512xf32>
    %6 = arith.addf %4, %5 : vector<32x512xf32>
    %cst_6 = arith.constant 0.000000e+00 : f32
    %7 = vector.broadcast %cst_6 : f32 to vector<32x512xf32>
    %8 = arith.maximumf %6, %7 : vector<32x512xf32>
    %c0_7 = arith.constant 0 : index
    %c0_8 = arith.constant 0 : index
    %9 = vector.load %arg5[%c0_7, %c0_8] : memref<64x32xf32, #tpu.memory_space<vmem>>, vector<64x32xf32>
    %c0_9 = arith.constant 0 : index
    %c0_10 = arith.constant 0 : index
    %10 = vector.load %arg6[%c0_9, %c0_10] : memref<64x1xf32, #tpu.memory_space<vmem>>, vector<64x1xf32>
    %cst_11 = arith.constant dense<0.000000e+00> : vector<64x512xf32>
    %11 = tpu.matmul %9, %8, %cst_11 {dimension_numbers = #tpu.dot_dimension_numbers<[1], [0], [0], [1], [0, 0, 1, 1], [], []>} : vector<64x32xf32>, vector<32x512xf32>, vector<64x512xf32> -> vector<64x512xf32>
    %12 = vector.broadcast %10 : vector<64x1xf32> to vector<64x512xf32>
    %13 = arith.addf %11, %12 : vector<64x512xf32>
    %cst_12 = arith.constant 0.000000e+00 : f32
    %14 = vector.broadcast %cst_12 : f32 to vector<64x512xf32>
    %15 = arith.maximumf %13, %14 : vector<64x512xf32>
    %c0_13 = arith.constant 0 : index
    %c0_14 = arith.constant 0 : index
    %16 = vector.load %arg7[%c0_13, %c0_14] : memref<8x64xf32, #tpu.memory_space<vmem>>, vector<8x64xf32>
    %c0_15 = arith.constant 0 : index
    %c0_16 = arith.constant 0 : index
    %17 = vector.load %arg8[%c0_15, %c0_16] : memref<8x1xf32, #tpu.memory_space<vmem>>, vector<8x1xf32>
    %cst_17 = arith.constant dense<0.000000e+00> : vector<8x512xf32>
    %18 = tpu.matmul %16, %15, %cst_17 {dimension_numbers = #tpu.dot_dimension_numbers<[1], [0], [0], [1], [0, 0, 1, 1], [], []>} : vector<8x64xf32>, vector<64x512xf32>, vector<8x512xf32> -> vector<8x512xf32>
    %19 = vector.broadcast %17 : vector<8x1xf32> to vector<8x512xf32>
    %20 = arith.addf %18, %19 : vector<8x512xf32>
    %c0_18 = arith.constant 0 : index
    %c0_19 = arith.constant 0 : index
    %c0_20 = arith.constant 0 : index
    %21 = vector.load %arg9[%c0_18, %c0_19, %c0_20] : memref<1x8x512xf32, #tpu.memory_space<vmem>>, vector<1x8x512xf32>
    %22 = vector.shape_cast %21 : vector<1x8x512xf32> to vector<8x512xf32>
    %23 = vector.shape_cast %20 : vector<8x512xf32> to vector<1x8x512xf32>
    tpu.vector_store %arg9[%c0_18, %c0_19, %c0_20], %23 {strides = array<i32>} : memref<1x8x512xf32, #tpu.memory_space<vmem>>, vector<1x8x512xf32>,
    return
  }
  func.func @transform_0(%arg0: i32, %arg1: i32) -> (i32, i32, i32) {
    %c0_i32 = arith.constant 0 : i32
    %c0_i32_0 = arith.constant 0 : i32
    return %arg0, %c0_i32, %arg1 : i32, i32, i32
  }
  func.func @transform_1(%arg0: i32, %arg1: i32) -> (i32, i32) {
    %c0_i32 = arith.constant 0 : i32
    %c0_i32_0 = arith.constant 0 : i32
    %c0_i32_1 = arith.constant 0 : i32
    return %c0_i32, %c0_i32_0 : i32, i32
  }
  func.func @transform_2(%arg0: i32, %arg1: i32) -> (i32, i32) {
    %c0_i32 = arith.constant 0 : i32
    %c0_i32_0 = arith.constant 0 : i32
    %c0_i32_1 = arith.constant 0 : i32
    return %c0_i32, %c0_i32_0 : i32, i32
  }
  func.func @transform_3(%arg0: i32, %arg1: i32) -> (i32, i32) {
    %c0_i32 = arith.constant 0 : i32
    %c0_i32_0 = arith.constant 0 : i32
    %c0_i32_1 = arith.constant 0 : i32
    return %c0_i32, %c0_i32_0 : i32, i32
  }
  func.func @transform_4(%arg0: i32, %arg1: i32) -> (i32, i32) {
    %c0_i32 = arith.constant 0 : i32
    %c0_i32_0 = arith.constant 0 : i32
    %c0_i32_1 = arith.constant 0 : i32
    return %c0_i32, %c0_i32_0 : i32, i32
  }
  func.func @transform_5(%arg0: i32, %arg1: i32) -> (i32, i32) {
    %c0_i32 = arith.constant 0 : i32
    %c0_i32_0 = arith.constant 0 : i32
    %c0_i32_1 = arith.constant 0 : i32
    return %c0_i32, %c0_i32_0 : i32, i32
  }
  func.func @transform_6(%arg0: i32, %arg1: i32) -> (i32, i32) {
    %c0_i32 = arith.constant 0 : i32
    %c0_i32_0 = arith.constant 0 : i32
    %c0_i32_1 = arith.constant 0 : i32
    return %c0_i32, %c0_i32_0 : i32, i32
  }
  func.func @transform_7(%arg0: i32, %arg1: i32) -> (i32, i32, i32) {
    %c0_i32 = arith.constant 0 : i32
    %c0_i32_0 = arith.constant 0 : i32
    return %arg0, %c0_i32, %arg1 : i32, i32, i32
  }
}

</mosaic_0001>

<bundles_post_ra>
// kernel: mlp_forward.1
= control target key start
LH: loop header
LB: loop body
LE: loop exit
PB: predicated region body
PF: predicated region fallthrough
CT: control target
= control target key end

     0   :  { %12 = vsyncpa [#allocation3], 0  ;;  %s1664_s0 = inlined_call_operand.vmem [shape: f32[2,4,512], index: 0, kind: input, shape index: {}]   ;;  %s1665_s1 = inlined_call_operand.vmem [shape: f32[32,4], index: 1, kind: input, shape index: {}]   ;;  %s1666_s2 = inlined_call_operand.vmem [shape: f32[32,1], index: 2, kind: input, shape index: {}]   ;;  %s1667_s3 = inlined_call_operand.vmem [shape: f32[64,32], index: 3, kind: input, shape index: {}]   ;;  %s1668_s4 = inlined_call_operand.vmem [shape: f32[64,1], index: 4, kind: input, shape index: {}]   ;;  %s1669_s5 = inlined_call_operand.vmem [shape: f32[8,64], index: 5, kind: input, shape index: {}]   ;;  %s1670_s6 = inlined_call_operand.vmem [shape: f32[8,1], index: 6, kind: input, shape index: {}]   ;;  %s1671_s7 = inlined_call_operand.hbm [shape: f32[2,8,512], index: 7, kind: output, shape index: {}]  }
   0x1   :  { %14 = vsyncpa [#allocation3 + $0x1], 0  ;;  %s1424_s24 = smov 0   ;;  %s1426_s25 = smov 0  }
   0x2   :  { %s1428_s26 = smov 0   ;;  %s1430_s27 = smov 0  }
   0x3   :  { %s1432_s28 = smov 0   ;;  %s1434_s29 = smov 0  }
   0x4 LB: > { %s1147_s30 = sadd.s32 4294967295, %s1379_s29   ;;  %s1148_s8 = sadd.s32 4294967294, %s1379_s29   ;;  %s1379_s29 = sphi %s1434_s29, %s20_s29   ;;  %s1375_s28 = sphi %s1432_s28, %s1678_s28   ;;  %s1371_s27 = sphi %s1430_s27, %s1677_s27   ;;  %s1367_s26 = sphi %s1428_s26, %s1676_s26   ;;  %s1363_s25 = sphi %s1426_s25, %s1675_s25   ;;  %s1359_s24 = sphi %s1424_s24, %s1674_s24  }
   0x5   : > { %s32_s9 = sadd.s32 1, %s1375_s28  ;;  %s195_s10 = sadd.s32 1, %s1367_s26 }
   0x6   : > { %p34_p0 = scmp.ge.s32.totalorder %s32_s9, 2  ;;  %p205_p1 = scmp.ne.s32.totalorder %s1367_s26, %s1363_s25 }
   0x7   : > { %p206_p2 = scmp.eq.s32.totalorder %s1147_s30, 1  ;;  %p211_p3 = scmp.ne.s32.totalorder %s1363_s25, %s1359_s24 }
   0x8   : > { %s1680_s9 = smov (%p34_p0, %s32_s9), 0  ;;  %p212_p5 = scmp.eq.s32.totalorder %s1148_s8, 1 }
   0x9   : > { %p1464_p4 = por %p206_p2, %p205_p1  ;;  %s190_s12 = ssub.s32 %s1375_s28, %s1680_s9 }
   0xa   : > { %p1151_p6 = scmp.ge.s32.totalorder %s1379_s29, 1  ;;  %p193_p7 = scmp.eq.s32.totalorder %s190_s12, 0 }
   0xb   : > { %p1471_p8 = por %p212_p5, %p211_p3  ;;  %p261_p9 = scmp.lt.s32.totalorder %s1379_s29, 3 }
   0xc   : > { %s1477_s14 = scalar_select %p193_p7, %s1367_s26, %s195_s10  }
   0xd   : > { %p262_p10 = pnand %p1151_p6, %p261_p9 }
   0xe   : > { %p298_p11 = scmp.lt.s32.totalorder (!%p262_p10), %s1371_s27, 1  ;;  %v1381_v0 = vmov (!%p262_p10), 0.0   ;;  %v314_v1 = vld [vmem:[%s1666_s2] sm:$0xff] (!%p262_p10)  ;;  %v1382_v2 = vmov (!%p262_p10), 0   ;;  %v316_v3 = vld [vmem:[%s1666_s2 + $0x10] sm:$0xff] (!%p262_p10)  ;;  %v315_v4 = vld [vmem:[%s1666_s2 + $0x8] sm:$0xff] (!%p262_p10) }
   0xf   : > { %265 = sbr.rel (%p262_p10) target bundleno = 746 (0x2ea), region = 48  ;;  %428 = vmatprep.mubr.f32.mxu0 (!%p262_p10), %v1381_v0  ;;  %517 = vmatprep.mubr.f32.mxu1 (!%p262_p10), %v1381_v0  ;;  %v317_v5 = vld [vmem:[%s1666_s2 + $0x18] sm:$0xff] (!%p262_p10)  ;;  %vm355_vm0 = vcmask (!%p262_p10), 1043456   ;;  %v310_v10 = vld [vmem:[%s1665_s1] sm:$0xff] (!%p262_p10)  ;;  %vm342_vm1 = vcmask (!%p262_p10), 31744   ;;  %v567_v12 = vld [vmem:[%s1668_s4 + $0x8] sm:$0xff] (!%p262_p10) }
  0x10   : > { %1297 = vset.pattern.permute.xlu0 (!%p262_p10), %v1382_v2  ;;  %1298 = vset.pattern.permute.xlu1 (!%p262_p10), %v1382_v2  ;;  %v566_v11 = vld [vmem:[%s1668_s4] sm:$0xff] (!%p262_p10)  ;;  %v311_v13 = vld [vmem:[%s1665_s1 + $0x8] sm:$0xff] (!%p262_p10)  ;;  %v568_v14 = vld [vmem:[%s1668_s4 + $0x10] sm:$0xff] (!%p262_p10)  ;;  %vm614_vm2 = vcmask (!%p262_p10), 261120   ;;  %vm904_vm3 = vcmask (!%p262_p10), 523264   ;;  %s1191_s22 = sshll.u32 (!%p262_p10), %s1371_s27, 9 }
  0x11   : > { %320 = vperm.xlu0 (!%p262_p10), %1297, %v314_v1   ;;  %330 = vperm.xlu1 (!%p262_p10), %1298, %v316_v3   ;;  %v569_v15 = vld [vmem:[%s1668_s4 + $0x18] sm:$0xff] (!%p262_p10)  ;;  %v312_v16 = vld [vmem:[%s1665_s1 + $0x10] sm:$0xff] (!%p262_p10)  ;;  %v570_v17 = vld [vmem:[%s1668_s4 + $0x20] sm:$0xff] (!%p262_p10)  ;;  %s1383_s16 = smov (!%p262_p10), [#allocation2]  }
  0x12   : > { %v571_v18 = vld [vmem:[%s1668_s4 + $0x28] sm:$0xff] (!%p262_p10)  ;;  %v313_v19 = vld [vmem:[%s1665_s1 + $0x18] sm:$0xff] (!%p262_p10)  ;;  %v572_v20 = vld [vmem:[%s1668_s4 + $0x30] sm:$0xff] (!%p262_p10) }
  0x13   : > { %v573_v21 = vld [vmem:[%s1668_s4 + $0x38] sm:$0xff] (!%p262_p10)  ;;  %v898_v22 = vld [vmem:[%s1670_s6] sm:$0xff] (!%p262_p10) }
  0x15   : > { %325 = vperm.xlu0 (!%p262_p10), %1297, %v315_v4   ;;  %335 = vperm.xlu1 (!%p262_p10), %1298, %v317_v5  }
  0x16   : > { %s299_s17 = scalar_select %p298_p11, %s1371_s27, 1 }
  0x18   : > { %s1190_s20 = sshll.u32 %s299_s17, 4  ;;  %s1305_s17 = sshll.u32 %s1383_s16, 4  ;;  %s1306_s17 = int_to_ptr.vmem [resolvable:$false] %s1305_s17 }
  0x19   : > { %s305_s12 = scalar_lea.vmem %s1664_s0, %s1190_s20  ;;  %576 = vperm.xlu0 %1297, %v566_v11   ;;  %581 = vperm.xlu1 %1298, %v567_v12   ;;  %s294_s20 = sand.u32 1, %s1363_s25  }
  0x1a   : > { %v308_v6 = vld [vmem:[%s305_s12] sm:$0xff]  ;;  %v309_v7 = vld [vmem:[%s305_s12 + $0x8] sm:$0xff]  ;;  %s1152_s21 = sshll.u32 %s294_s20, 5  ;;  %s1617_s12 = scalar_lea.hbm %s1671_s7, %s1191_s22 }
  0x1b   : > { %v340_v8 = vcombine.high %v308_v6, %v308_v6  ;;  %v341_v9 = vcombine.high %v309_v7, %v309_v7  ;;  %s296_s23 = scalar_lea.vmem [#allocation2], %s1152_s21  ;;  %s1055_s27 = scalar_lea.sflag [#allocation3], %s294_s20 }
  0x1c   : > { %s1071_s30 = sshll.u32 %s296_s23, 4  ;;  %s1307_s18 = scalar_lea.vmem %s1306_s17, 1024  ;;  %s1619_s30 = int_to_ptr.vmem [resolvable:$true] %s1071_s30 }
  0x1d   : > { %1155 = vmatprep.subr.msk.mxu0 %vm355_vm0, %v340_v8  ;;  %1161 = vmatprep.subr.msk.mxu1 %vm355_vm0, %v341_v9  ;;  %s1301_s15 = scalar_lea.vmem %s1619_s30, 512  ;;  %p1308_p1 = scmp.lt.s32.totalorder %s1619_s30, %s1306_s17 }
  0x1e   : > { %1156 = vmatpush1.msk.msra.mxu0 %vm355_vm0, %v308_v6  ;;  %1162 = vmatpush1.msk.msra.mxu1 %vm355_vm0, %v309_v7  ;;  %p1302_p12 = scmp.ne.s32.totalorder %s1619_s30, %s1301_s15  ;;  %p1309_p2 = scmp.lt.s32.totalorder %s1307_s18, %s1301_s15 }
  0x1f   : > { %1157 = vmatmul.mubr.msk.f32.vlgmr.msra.gmra.mrb[0].mxu0 %vm342_vm1, %v310_v10  ;;  %1163 = vmatmul.mubr.msk.f32.vlgmr.msra.gmra.mrb[0].mxu1 %vm342_vm1, %v310_v10 }
  0x20   : > { %434 = vmatprep.mubr.f32.mxu0 %v1381_v0  ;;  %523 = vmatprep.mubr.f32.mxu1 %v1381_v0  ;;  %p1303_p13 = pnand %p1302_p12, %p1464_p4  ;;  %p1310_p3 = por %p1309_p2, %p1308_p1 }
  0x21   : > { %586 = vperm.xlu0 %1297, %v568_v14   ;;  %591 = vperm.xlu1 %1298, %v569_v15  }
  0x22   : > { %p1304_p0 = pneg %p1303_p13 }
  0x23   : > { %1158 = vmatmul.mubr.msk.f32.gmra.mrb[2].mxu0 %vm342_vm1, %v311_v13  ;;  %1164 = vmatmul.mubr.msk.f32.gmra.mrb[2].mxu1 %vm342_vm1, %v311_v13 }
  0x24   : > { %440 = vmatprep.mubr.f32.mxu0 %v1381_v0  ;;  %529 = vmatprep.mubr.f32.mxu1 %v1381_v0  ;;  %p1311_p5 = pnand %p1310_p3, %p1304_p0 }
  0x25   : > { %596 = vperm.xlu0 %1297, %v570_v17   ;;  %601 = vperm.xlu1 %1298, %v571_v18  }
  0x27   : > { %1159 = vmatmul.mubr.msk.f32.gmra.mrb[4].mxu0 %vm342_vm1, %v312_v16  ;;  %1165 = vmatmul.mubr.msk.f32.gmra.mrb[4].mxu1 %vm342_vm1, %v312_v16 }
  0x28   : > { %446 = vmatprep.mubr.f32.mxu0 %v1381_v0  ;;  %535 = vmatprep.mubr.f32.mxu1 %v1381_v0 }
  0x29   : > { %606 = vperm.xlu0 %1297, %v572_v20   ;;  %611 = vperm.xlu1 %1298, %v573_v21   ;;  %v558_v20 = vld [vmem:[%s1667_s3] sm:$0xff]  ;;  %v559_v21 = vld [vmem:[%s1667_s3 + $0x8] sm:$0xff] }
  0x2b   : > { %1160 = vmatmul.mubr.msk.f32.gmra.mrb[6].mxu0 %vm342_vm1, %v313_v19  ;;  %1166 = vmatmul.mubr.msk.f32.gmra.mrb[6].mxu1 %vm342_vm1, %v313_v19 }
  0x2c   : > { %703 = vmatprep.mubr.f32.mxu0 %v1381_v0  ;;  %816 = vmatprep.mubr.f32.mxu1 %v1381_v0 }
  0x2d   : > { %901 = vperm.xlu0 %1297, %v898_v22   ;;  %v560_v22 = vld [vmem:[%s1667_s3 + $0x10] sm:$0xff] }
  0x90   : > { %v321_v23 = vpop.permute.xlu0 %320  ;;  %v331_v29 = vpop.permute.xlu1 %330 }
  0x94   : > { %v326_v28 = vpop.permute.xlu0 %325  ;;  %v336_v58 = vpop.permute.xlu1 %335 }
  0xf2   : > { %v430_v24 = vpop.f32.mrb[0].mxu0  ;;  %v519_v25 = vpop.f32.mrb[0].mxu1 }
  0xf3   : > { %v432_v26 = vpop.f32.mrb[1].mxu0  ;;  %v521_v27 = vpop.f32.mrb[1].mxu1  ;;  %v431_v30 = vadd.f32 %v430_v24, %v321_v23  ;;  %v520_v31 = vadd.f32 %v519_v25, %v321_v23  ;;  %v562_v24 = vld [vmem:[%s1667_s3 + $0x20] sm:$0xff]  ;;  %v563_v25 = vld [vmem:[%s1667_s3 + $0x28] sm:$0xff] }
  0xf4   : > { %v433_v32 = vadd.f32 %v432_v26, %v321_v23  ;;  %v522_v33 = vadd.f32 %v521_v27, %v321_v23  ;;  %v561_v23 = vld [vmem:[%s1667_s3 + $0x18] sm:$0xff]  ;;  %v564_v26 = vld [vmem:[%s1667_s3 + $0x30] sm:$0xff] }
  0xf5   : > { %v542_v42 = vmax.f32 %v431_v30, 0.0  ;;  %v544_v43 = vmax.f32 %v520_v31, 0.0  ;;  %v565_v27 = vld [vmem:[%s1667_s3 + $0x38] sm:$0xff] }
  0xf6   : > { %v436_v34 = vpop.f32.mrb[2].mxu0  ;;  %v525_v35 = vpop.f32.mrb[2].mxu1  ;;  %v543_v46 = vmax.f32 %v433_v32, 0.0  ;;  %v545_v47 = vmax.f32 %v522_v33, 0.0 }
  0xf7   : > { %v437_v36 = vadd.f32 %v436_v34, %v326_v28  ;;  %v526_v37 = vadd.f32 %v525_v35, %v326_v28  ;;  %v438_v38 = vpop.f32.mrb[3].mxu0  ;;  %v527_v39 = vpop.f32.mrb[3].mxu1 }
  0xf8   : > { %v439_v40 = vadd.f32 %v438_v38, %v326_v28  ;;  %v528_v41 = vadd.f32 %v527_v39, %v326_v28  ;;  %v577_v32 = vpop.permute.xlu0 %576  ;;  %v582_v33 = vpop.permute.xlu1 %581 }
  0xf9   : > { %v546_v44 = vmax.f32 %v437_v36, 0.0  ;;  %v548_v45 = vmax.f32 %v526_v37, 0.0 }
  0xfa   : > { %v547_v48 = vmax.f32 %v439_v40, 0.0  ;;  %v549_v49 = vmax.f32 %v528_v41, 0.0  ;;  %v442_v50 = vpop.f32.mrb[4].mxu0  ;;  %v531_v51 = vpop.f32.mrb[4].mxu1 }
  0xfb   : > { %v1194_v52 = vpack.c.bf16 %v546_v44, %v542_v42  ;;  %v1202_v53 = vpack.c.bf16 %v548_v45, %v544_v43  ;;  %v444_v54 = vpop.f32.mrb[5].mxu0  ;;  %v533_v55 = vpop.f32.mrb[5].mxu1  ;;  %v443_v59 = vadd.f32 %v442_v50, %v331_v29  ;;  %v532_v60 = vadd.f32 %v531_v51, %v331_v29 }
  0xfc   : > { %v1192_v56 = vpack.c.bf16 %v547_v48, %v543_v46  ;;  %v1200_v57 = vpack.c.bf16 %v549_v49, %v545_v47  ;;  %v445_v61 = vadd.f32 %v444_v54, %v331_v29  ;;  %v534_v62 = vadd.f32 %v533_v55, %v331_v29 }
  0xfd   : > { %v550_v8 = vmax.f32 %v443_v59, 0.0  ;;  %v552_v9 = vmax.f32 %v532_v60, 0.0  ;;  %v587_v59 = vpop.permute.xlu0 %586 }
  0xfe   : > { %v448_v63 = vpop.f32.mrb[6].mxu0  ;;  %v537_v1 = vpop.f32.mrb[6].mxu1  ;;  %1193 = vmatprep.subr.bf16.mxu0 %v1192_v56  ;;  %1201 = vmatprep.subr.bf16.mxu1 %v1200_v57  ;;  %v551_v12 = vmax.f32 %v445_v61, 0.0  ;;  %v553_v13 = vmax.f32 %v534_v62, 0.0 }
  0xff   : > { %v449_v2 = vadd.f32 %v448_v63, %v336_v58  ;;  %v538_v3 = vadd.f32 %v537_v1, %v336_v58  ;;  %v450_v4 = vpop.f32.mrb[7].mxu0  ;;  %v539_v5 = vpop.f32.mrb[7].mxu1  ;;  %1195 = vmatpush1.bf16.msra.mxu0 %v1194_v52  ;;  %1203 = vmatpush1.bf16.msra.mxu1 %v1202_v53 }
 0x100   : > { %v451_v6 = vadd.f32 %v450_v4, %v336_v58  ;;  %v540_v7 = vadd.f32 %v539_v5, %v336_v58  ;;  %v592_v62 = vpop.permute.xlu1 %591 }
 0x101   : > { %v554_v10 = vmax.f32 %v449_v2, 0.0  ;;  %v556_v11 = vmax.f32 %v538_v3, 0.0 }
 0x102   : > { %v555_v14 = vmax.f32 %v451_v6, 0.0  ;;  %v557_v15 = vmax.f32 %v540_v7, 0.0 }
 0x103   : > { %v1198_v16 = vpack.c.bf16 %v554_v10, %v550_v8  ;;  %v1206_v17 = vpack.c.bf16 %v556_v11, %v552_v9 }
 0x104   : > { %v1196_v18 = vpack.c.bf16 %v555_v14, %v551_v12  ;;  %v1204_v19 = vpack.c.bf16 %v557_v15, %v553_v13 }
 0x106   : > { %1197 = vmatprep.subr.bf16.mxu0 %v1196_v18  ;;  %1205 = vmatprep.subr.bf16.mxu1 %v1204_v19 }
 0x107   : > { %1199 = vmatpush1.bf16.msra.mxu0 %v1198_v16  ;;  %1207 = vmatpush1.bf16.msra.mxu1 %v1206_v17 }
 0x10a   : > { %1167 = vmatmul.mubr.msk.f32.vlgmr.msra.gmra.mrb[8].mxu0 %vm614_vm2, %v558_v20  ;;  %1175 = vmatmul.mubr.msk.f32.vlgmr.msra.gmra.mrb[8].mxu1 %vm614_vm2, %v558_v20 }
 0x10b   : > { %709 = vmatprep.mubr.f32.mxu0 %v1381_v0  ;;  %822 = vmatprep.mubr.f32.mxu1 %v1381_v0 }
 0x10e   : > { %1168 = vmatmul.mubr.msk.f32.gmra.mrb[10].mxu0 %vm614_vm2, %v559_v21  ;;  %1176 = vmatmul.mubr.msk.f32.gmra.mrb[10].mxu1 %vm614_vm2, %v559_v21 }
 0x10f   : > { %715 = vmatprep.mubr.f32.mxu0 %v1381_v0  ;;  %828 = vmatprep.mubr.f32.mxu1 %v1381_v0 }
 0x112   : > { %1169 = vmatmul.mubr.msk.f32.gmra.mrb[12].mxu0 %vm614_vm2, %v560_v22  ;;  %1177 = vmatmul.mubr.msk.f32.gmra.mrb[12].mxu1 %vm614_vm2, %v560_v22 }
 0x113   : > { %721 = vmatprep.mubr.f32.mxu0 %v1381_v0  ;;  %834 = vmatprep.mubr.f32.mxu1 %v1381_v0 }
 0x116   : > { %1170 = vmatmul.mubr.msk.f32.gmra.mrb[14].mxu0 %vm614_vm2, %v561_v23  ;;  %1178 = vmatmul.mubr.msk.f32.gmra.mrb[14].mxu1 %vm614_vm2, %v561_v23 }
 0x117   : > { %727 = vmatprep.mubr.f32.mxu0 %v1381_v0  ;;  %840 = vmatprep.mubr.f32.mxu1 %v1381_v0 }
 0x11a   : > { %1171 = vmatmul.mubr.msk.f32.gmra.mrb[16].mxu0 %vm614_vm2, %v562_v24  ;;  %1179 = vmatmul.mubr.msk.f32.gmra.mrb[16].mxu1 %vm614_vm2, %v562_v24 }
 0x11b   : > { %733 = vmatprep.mubr.f32.mxu0 %v1381_v0  ;;  %846 = vmatprep.mubr.f32.mxu1 %v1381_v0 }
 0x11e   : > { %1172 = vmatmul.mubr.msk.f32.gmra.mrb[18].mxu0 %vm614_vm2, %v563_v25  ;;  %1180 = vmatmul.mubr.msk.f32.gmra.mrb[18].mxu1 %vm614_vm2, %v563_v25 }
 0x11f   : > { %739 = vmatprep.mubr.f32.mxu0 %v1381_v0  ;;  %852 = vmatprep.mubr.f32.mxu1 %v1381_v0 }
 0x122   : > { %1173 = vmatmul.mubr.msk.f32.gmra.mrb[20].mxu0 %vm614_vm2, %v564_v26  ;;  %1181 = vmatmul.mubr.msk.f32.gmra.mrb[20].mxu1 %vm614_vm2, %v564_v26  ;;  %v597_v26 = vpop.permute.xlu0 %596 }
 0x123   : > { %745 = vmatprep.mubr.f32.mxu0 %v1381_v0  ;;  %858 = vmatprep.mubr.f32.mxu1 %v1381_v0 }
 0x126   : > { %1174 = vmatmul.mubr.msk.f32.gmra.mrb[22].mxu0 %vm614_vm2, %v565_v27  ;;  %1182 = vmatmul.mubr.msk.f32.gmra.mrb[22].mxu1 %vm614_vm2, %v565_v27 }
 0x127   : > { %972 = vmatprep.mubr.f32.mxu0 %v1381_v0  ;;  %1043 = vmatprep.mubr.f32.mxu1 %v1381_v0 }
 0x1dd   : > { %v705_v28 = vpop.f32.mrb[8].mxu0  ;;  %v818_v29 = vpop.f32.mrb[8].mxu1 }
 0x1de   : > { %v707_v30 = vpop.f32.mrb[9].mxu0  ;;  %v820_v31 = vpop.f32.mrb[9].mxu1  ;;  %v706_v34 = vadd.f32 %v705_v28, %v577_v32  ;;  %v819_v35 = vadd.f32 %v818_v29, %v577_v32 }
 0x1df   : > { %v708_v36 = vadd.f32 %v707_v30, %v577_v32  ;;  %v821_v37 = vadd.f32 %v820_v31, %v577_v32  ;;  %v602_v29 = vpop.permute.xlu1 %601 }
 0x1e0   : > { %v865_v46 = vmax.f32 %v706_v34, 0.0  ;;  %v867_v0 = vmax.f32 %v819_v35, 0.0 }
 0x1e1   : > { %v711_v38 = vpop.f32.mrb[10].mxu0  ;;  %v824_v39 = vpop.f32.mrb[10].mxu1  ;;  %v866_v49 = vmax.f32 %v708_v36, 0.0  ;;  %v868_v50 = vmax.f32 %v821_v37, 0.0 }
 0x1e2   : > { %v712_v40 = vadd.f32 %v711_v38, %v582_v33  ;;  %v825_v41 = vadd.f32 %v824_v39, %v582_v33  ;;  %v713_v42 = vpop.f32.mrb[11].mxu0  ;;  %v826_v43 = vpop.f32.mrb[11].mxu1 }
 0x1e3   : > { %v714_v44 = vadd.f32 %v713_v42, %v582_v33  ;;  %v827_v45 = vadd.f32 %v826_v43, %v582_v33 }
 0x1e4   : > { %v869_v47 = vmax.f32 %v712_v40, 0.0  ;;  %v871_v48 = vmax.f32 %v825_v41, 0.0 }
 0x1e5   : > { %v870_v51 = vmax.f32 %v714_v44, 0.0  ;;  %v872_v52 = vmax.f32 %v827_v45, 0.0  ;;  %v717_v53 = vpop.f32.mrb[12].mxu0  ;;  %v830_v54 = vpop.f32.mrb[12].mxu1 }
 0x1e6   : > { %v1210_v55 = vpack.c.bf16 %v869_v47, %v865_v46  ;;  %v1226_v56 = vpack.c.bf16 %v871_v48, %v867_v0  ;;  %v719_v57 = vpop.f32.mrb[13].mxu0  ;;  %v832_v58 = vpop.f32.mrb[13].mxu1  ;;  %v718_v63 = vadd.f32 %v717_v53, %v587_v59  ;;  %v831_v1 = vadd.f32 %v830_v54, %v587_v59 }
 0x1e7   : > { %v1208_v60 = vpack.c.bf16 %v870_v51, %v866_v49  ;;  %v1224_v61 = vpack.c.bf16 %v872_v52, %v868_v50  ;;  %v720_v2 = vadd.f32 %v719_v57, %v587_v59  ;;  %v833_v3 = vadd.f32 %v832_v58, %v587_v59  ;;  %v612_v58 = vpop.permute.xlu1 %611 }
 0x1e8   : > { %v873_v12 = vmax.f32 %v718_v63, 0.0  ;;  %v875_v13 = vmax.f32 %v831_v1, 0.0 }
 0x1e9   : > { %v723_v4 = vpop.f32.mrb[14].mxu0  ;;  %v836_v5 = vpop.f32.mrb[14].mxu1  ;;  %1209 = vmatprep.subr.bf16.mxu0 %v1208_v60  ;;  %1225 = vmatprep.subr.bf16.mxu1 %v1224_v61  ;;  %v874_v16 = vmax.f32 %v720_v2, 0.0  ;;  %v876_v17 = vmax.f32 %v833_v3, 0.0 }
 0x1ea   : > { %v724_v6 = vadd.f32 %v723_v4, %v592_v62  ;;  %v837_v7 = vadd.f32 %v836_v5, %v592_v62  ;;  %v725_v8 = vpop.f32.mrb[15].mxu0  ;;  %v838_v9 = vpop.f32.mrb[15].mxu1  ;;  %1211 = vmatpush1.bf16.msra.mxu0 %v1210_v55  ;;  %1227 = vmatpush1.bf16.msra.mxu1 %v1226_v56 }
 0x1eb   : > { %v726_v10 = vadd.f32 %v725_v8, %v592_v62  ;;  %v839_v11 = vadd.f32 %v838_v9, %v592_v62  ;;  %v607_v55 = vpop.permute.xlu0 %606 }
 0x1ec   : > { %v877_v14 = vmax.f32 %v724_v6, 0.0  ;;  %v879_v15 = vmax.f32 %v837_v7, 0.0 }
 0x1ed   : > { %v878_v18 = vmax.f32 %v726_v10, 0.0  ;;  %v880_v19 = vmax.f32 %v839_v11, 0.0  ;;  %v729_v20 = vpop.f32.mrb[16].mxu0  ;;  %v842_v21 = vpop.f32.mrb[16].mxu1 }
 0x1ee   : > { %v1214_v22 = vpack.c.bf16 %v877_v14, %v873_v12  ;;  %v1230_v23 = vpack.c.bf16 %v879_v15, %v875_v13  ;;  %v731_v24 = vpop.f32.mrb[17].mxu0  ;;  %v844_v25 = vpop.f32.mrb[17].mxu1  ;;  %v730_v30 = vadd.f32 %v729_v20, %v597_v26  ;;  %v843_v31 = vadd.f32 %v842_v21, %v597_v26  ;;  %v897_v20 = vld [vmem:[%s1669_s5] sm:$0xff] }
 0x1ef   : > { %v1212_v27 = vpack.c.bf16 %v878_v18, %v874_v16  ;;  %v1228_v28 = vpack.c.bf16 %v880_v19, %v876_v17  ;;  %v732_v32 = vadd.f32 %v731_v24, %v597_v26  ;;  %v845_v33 = vadd.f32 %v844_v25, %v597_v26  ;;  %v902_v21 = vpop.permute.xlu0 %901 }
 0x1f0   : > { %v881_v42 = vmax.f32 %v730_v30, 0.0  ;;  %v883_v43 = vmax.f32 %v843_v31, 0.0 }
 0x1f1   : > { %v735_v34 = vpop.f32.mrb[18].mxu0  ;;  %v848_v35 = vpop.f32.mrb[18].mxu1  ;;  %1213 = vmatprep.subr.bf16.mxu0 %v1212_v27  ;;  %1229 = vmatprep.subr.bf16.mxu1 %v1228_v28  ;;  %v882_v46 = vmax.f32 %v732_v32, 0.0  ;;  %v884_v0 = vmax.f32 %v845_v33, 0.0 }
 0x1f2   : > { %v736_v36 = vadd.f32 %v735_v34, %v602_v29  ;;  %v849_v37 = vadd.f32 %v848_v35, %v602_v29  ;;  %v737_v38 = vpop.f32.mrb[19].mxu0  ;;  %v850_v39 = vpop.f32.mrb[19].mxu1  ;;  %1215 = vmatpush1.bf16.msra.mxu0 %v1214_v22  ;;  %1231 = vmatpush1.bf16.msra.mxu1 %v1230_v23 }
 0x1f3   : > { %v738_v40 = vadd.f32 %v737_v38, %v602_v29  ;;  %v851_v41 = vadd.f32 %v850_v39, %v602_v29 }
 0x1f4   : > { %v885_v44 = vmax.f32 %v736_v36, 0.0  ;;  %v887_v45 = vmax.f32 %v849_v37, 0.0 }
 0x1f5   : > { %v886_v47 = vmax.f32 %v738_v40, 0.0  ;;  %v888_v48 = vmax.f32 %v851_v41, 0.0  ;;  %v741_v49 = vpop.f32.mrb[20].mxu0  ;;  %v854_v50 = vpop.f32.mrb[20].mxu1 }
 0x1f6   : > { %v1218_v51 = vpack.c.bf16 %v885_v44, %v881_v42  ;;  %v1234_v52 = vpack.c.bf16 %v887_v45, %v883_v43  ;;  %v743_v53 = vpop.f32.mrb[21].mxu0  ;;  %v856_v54 = vpop.f32.mrb[21].mxu1  ;;  %v742_v59 = vadd.f32 %v741_v49, %v607_v55  ;;  %v855_v60 = vadd.f32 %v854_v50, %v607_v55 }
 0x1f7   : > { %v1216_v56 = vpack.c.bf16 %v886_v47, %v882_v46  ;;  %v1232_v57 = vpack.c.bf16 %v888_v48, %v884_v0  ;;  %v744_v61 = vadd.f32 %v743_v53, %v607_v55  ;;  %v857_v62 = vadd.f32 %v856_v54, %v607_v55 }
 0x1f8   : > { %v889_v8 = vmax.f32 %v742_v59, 0.0  ;;  %v891_v9 = vmax.f32 %v855_v60, 0.0 }
 0x1f9   : > { %v747_v63 = vpop.f32.mrb[22].mxu0  ;;  %v860_v1 = vpop.f32.mrb[22].mxu1  ;;  %1217 = vmatprep.subr.bf16.mxu0 %v1216_v56  ;;  %1233 = vmatprep.subr.bf16.mxu1 %v1232_v57  ;;  %v890_v12 = vmax.f32 %v744_v61, 0.0  ;;  %v892_v13 = vmax.f32 %v857_v62, 0.0 }
 0x1fa   : > { %v748_v2 = vadd.f32 %v747_v63, %v612_v58  ;;  %v861_v3 = vadd.f32 %v860_v1, %v612_v58  ;;  %v749_v4 = vpop.f32.mrb[23].mxu0  ;;  %v862_v5 = vpop.f32.mrb[23].mxu1  ;;  %1219 = vmatpush1.bf16.msra.mxu0 %v1218_v51  ;;  %1235 = vmatpush1.bf16.msra.mxu1 %v1234_v52 }
 0x1fb   : > { %v750_v6 = vadd.f32 %v749_v4, %v612_v58  ;;  %v863_v7 = vadd.f32 %v862_v5, %v612_v58 }
 0x1fc   : > { %v893_v10 = vmax.f32 %v748_v2, 0.0  ;;  %v895_v11 = vmax.f32 %v861_v3, 0.0 }
 0x1fd   : > { %v894_v14 = vmax.f32 %v750_v6, 0.0  ;;  %v896_v15 = vmax.f32 %v863_v7, 0.0 }
 0x1fe   : > { %v1222_v16 = vpack.c.bf16 %v893_v10, %v889_v8  ;;  %v1238_v17 = vpack.c.bf16 %v895_v11, %v891_v9 }
 0x1ff   : > { %v1220_v18 = vpack.c.bf16 %v894_v14, %v890_v12  ;;  %v1236_v19 = vpack.c.bf16 %v896_v15, %v892_v13 }
 0x201   : > { %1221 = vmatprep.subr.bf16.mxu0 %v1220_v18  ;;  %1237 = vmatprep.subr.bf16.mxu1 %v1236_v19 }
 0x202   : > { %1223 = vmatpush1.bf16.msra.mxu0 %v1222_v16  ;;  %1239 = vmatpush1.bf16.msra.mxu1 %v1238_v17 }
 0x205   : > { %1183 = vmatmul.mubr.msk.f32.vlgmr.msra.gmra.mrb[24].mxu0 %vm904_vm3, %v897_v20  ;;  %1184 = vmatmul.mubr.msk.f32.vlgmr.msra.gmra.mrb[24].mxu1 %vm904_vm3, %v897_v20 }
 0x2d8   : > { %v974_v22 = vpop.f32.mrb[24].mxu0  ;;  %v1045_v23 = vpop.f32.mrb[24].mxu1 }
 0x2d9   : > { %v975_v24 = vadd.f32 %v974_v22, %v902_v21  ;;  %v1046_v25 = vadd.f32 %v1045_v23, %v902_v21  ;;  %v976_v26 = vpop.f32.mrb[25].mxu0  ;;  %v1047_v27 = vpop.f32.mrb[25].mxu1 }
 0x2da   : > { %v977_v28 = vadd.f32 %v976_v26, %v902_v21  ;;  %v1048_v29 = vadd.f32 %v1047_v27, %v902_v21 }
 0x2db   : > { %1050 = vst [vmem:[%s296_s23] sm:$0xff] %v975_v24  ;;  %1052 = vst [vmem:[%s296_s23 + $0x10] sm:$0xff] %v1046_v25 }
 0x2dc   : > { %1051 = vst [vmem:[%s296_s23 + $0x8] sm:$0xff] %v977_v28  ;;  %1053 = vst [vmem:[%s296_s23 + $0x18] sm:$0xff] %v1048_v29 }
 0x2dd   : > { %1314 = shalt.err (!%p1311_p5)
}
 0x2de   : > { %s1315_s19 = scalar_lea.hbm %s1617_s12, 512  ;;  %s1319_s22 = scalar_lea.hbm %s1671_s7, 1024 }
 0x2df   : > { %p1316_p6 = scmp.ne.s32.totalorder %s1617_s12, %s1315_s19  ;;  %p1320_p10 = scmp.lt.u32.totalorder %s1617_s12, %s1671_s7 }
 0x2e0   : > { %p1321_p11 = scmp.lt.u32.totalorder %s1319_s22, %s1315_s19  ;;  %p1323_p13 = scmp.lt.u32.totalorder %s1315_s19, %s1617_s12 }
 0x2e1   : > { %p1317_p7 = pnand %p1316_p6, %p1464_p4 }
 0x2e2   : > { %p1322_p12 = por %p1321_p11, %p1320_p10 }
 0x2e3   : > { %p1318_p9 = pneg %p1317_p7 }
 0x2e4   : > { %p1324_p0 = por %p1323_p13, %p1322_p12 }
 0x2e6   : > { %p1325_p1 = pnand %p1324_p0, %p1318_p9 }
 0x2e8   : > { %1328 = shalt.err (!%p1325_p1)
}
 0x2e9   : > { %1240 = dma.vmem_to_hbm [thread:$0]  (%p1464_p4), %s1619_s30, 512, %s1617_s12, %s1055_s27  }
 0x2ea PF: > { %p1246_p2 = scmp.ge.s32.totalorder %s1379_s29, 2  ;;  %s1083_s10 = sand.u32 1, %s1359_s24  }
 0x2eb   : > { %s1084_s15 = scalar_lea.sflag [#allocation3], %s1083_s10 }
 0x2ec   : > { %p1243_p3 = pnand %p1246_p2, %p1471_p8 }
 0x2ee   : > { %1354 = dma.done.wait (!%p1243_p3), %s1084_s15, 512  }
 0x2ef   : > { %1356 = vsyncadd (!%p1243_p3), %s1084_s15, 4294966784  ;;  %s20_s29 = sadd.s32 1, %s1379_s29   ;;  %s1674_s24 = smov %s1363_s25 }
 0x2f0   : > { %p17_p5 = scmp.ge.s32.totalorder %s20_s29, 4   ;;  %s1675_s25 = smov %s1367_s26 }
 0x2f1   : > { %s1676_s26 = smov %s1477_s14  ;;  %s1677_s27 = smov %s1375_s28 }
 0x2f2   : > { %s1678_s28 = smov %s1680_s9  ;;  %19 = sbr.rel (!%p17_p5) target bundleno = 4 (0x4), region = 83 }
 0x2f9   :  { %1089 = vsyncpa [#allocation3], 1 }
 0x2fa   :  { %1091 = vsyncpa [#allocation3 + $0x1], 1 }

</bundles_post_ra>
